<compile_context>
chip_gen: v7x
topology: tpu7x:2x2x1
jax: 0.10.0
libtpu: 0.0.40
codegen_flags: <defaults>
</compile_context>

<pallas_src>
import jax
import jax.numpy as jnp
from jax.experimental import pallas as pl
from jax.experimental.pallas import tpu as pltpu


def _music_decoder_kernel(inp_ref, wt_ref, bt_ref, wh_ref, bh_ref,
                          w2_ref, b2_ref, cw_ref, cb_ref, uw_ref, ub_ref,
                          note_ref, tempo_ref):
    # inp_ref  : (Bt, M)       bf16  input tile
    # wt_ref   : (M, 1)  bf16  / bt_ref: (1, 1)   f32  -> tempo head of `linear`
    # wh_ref   : (M, Co) bf16  / bh_ref: (1, Co)  f32  -> hid head of `linear`
    # w2_ref   : (L, K*Co) f32 / b2_ref: (L, K*Co) f32 -> unpool w/b in im2col layout
    # cw_ref   : (K*Co, Emb) bf16 / cb_ref: (1, Emb) f32 -> Conv1d as one contraction
    # uw_ref   : (Emb, Siz)  bf16 / ub_ref: (1, Siz) f32 -> unemb
    # note_ref : (Bt*L, Siz) f32
    # tempo_ref: (Bt, 1)     f32
    Bt = inp_ref.shape[0]
    L, KCo = w2_ref.shape
    Co = wh_ref.shape[1]
    K = KCo // Co

    x = inp_ref[...]                                              # (Bt, M) bf16

    # tempo = linear(inp)[:, 0]
    tempo = (jnp.dot(x, wt_ref[...], preferred_element_type=jnp.float32)
             + bt_ref[...])                                       # (Bt, 1) f32
    tempo_ref[...] = tempo.astype(tempo_ref.dtype)

    # hid = linear(inp)[:, 1:]   (f32 accumulator)
    hid = (jnp.dot(x, wh_ref[...], preferred_element_type=jnp.float32)
           + bh_ref[...])                                         # (Bt, Co) f32

    # unpool + ReLU generated directly in im2col layout (pure VPU broadcast):
    #   win[b, l, k*Co + c] = relu(hid[b, c] * wu[l + k] + bu[l + k])
    hid_t = jnp.tile(hid, (1, K))                                 # (Bt, K*Co) f32
    win = jnp.maximum(hid_t[:, None, :] * w2_ref[...][None, :, :]
                      + b2_ref[...][None, :, :], 0.0)             # (Bt, L, K*Co) f32
    win = win.reshape(Bt * L, KCo)                                # (Bt*L, K*Co)

    # Conv1d(Co, Emb, K) == one MXU contraction over (k, c)
    conv = (jnp.dot(win.astype(jnp.bfloat16), cw_ref[...],
                    preferred_element_type=jnp.float32)
            + cb_ref[...])                                        # (Bt*L, Emb) f32

    # unemb: Linear(Emb, Siz)
    note = (jnp.dot(conv.astype(jnp.bfloat16), uw_ref[...],
                    preferred_element_type=jnp.float32)
            + ub_ref[...])                                        # (Bt*L, Siz) f32
    note_ref[...] = note.astype(note_ref.dtype)
    # TODO(synk): nn.Dropout layers are identity here (inference semantics);
    # train-mode stochastic dropout is not implemented.


def music_decoder_forward(inp, lin_w, lin_b, unpool_w, unpool_b,
                          conv_w, conv_b, unemb_w, unemb_b,
                          *, L, K, batch_tile=128):
    """Returns (note: (B*L, Siz) f32, tempo: (B,) f32)."""
    B, M = inp.shape
    Co = lin_w.shape[0] - 1
    Emb = conv_w.shape[0]
    Siz = unemb_w.shape[0]
    T = L + K - 1
    assert L >= K, "MusicDecoder: Seq length should >= kernel size"
    assert conv_w.shape == (Emb, Co, K)
    assert unpool_w.shape == (T, 1) and unpool_b.shape == (T,)

    f32, bf16 = jnp.float32, jnp.bfloat16

    # ---- parameter layout massaging (tiny, host-side glue) ----
    wt = jnp.transpose(lin_w[0:1, :]).astype(bf16)                # (M, 1)
    bt = lin_b[0:1].reshape(1, 1).astype(f32)
    wh = jnp.transpose(lin_w[1:, :]).astype(bf16)                 # (M, Co)
    bh = lin_b[1:].reshape(1, Co).astype(f32)

    wu = unpool_w.reshape(T).astype(f32)
    bu = unpool_b.reshape(T).astype(f32)
    idx = jnp.arange(L)[:, None] + jnp.arange(K)[None, :]         # (L, K): l + k
    w2 = jnp.repeat(wu[idx], Co, axis=1)                          # (L, K*Co)
    b2 = jnp.repeat(bu[idx], Co, axis=1)                          # (L, K*Co)

    # Conv weight in im2col layout: cw[k*Co + c, e] = conv_w[e, c, k]
    cw = jnp.transpose(conv_w, (2, 1, 0)).reshape(K * Co, Emb).astype(bf16)
    cb = conv_b.reshape(1, Emb).astype(f32)
    uw = jnp.transpose(unemb_w).astype(bf16)                      # (Emb, Siz)
    ub = unemb_b.reshape(1, Siz).astype(f32)

    x = inp.astype(bf16)                                          # halve HBM read of dominant input

    # Batch tiling: big tiles so the conv matmul M-dimension is Bt*L (>=128 on
    # v5e, >=256 on v6e/v7x once B is large). Everything per tile is tiny, so
    # the default 32 MiB scoped VMEM is plenty even on v7x (64 MiB physical).
    Bt = min(batch_tile, B)
    grid = (pl.cdiv(B, Bt),)

    const = lambda g: (0, 0)
    grid_spec = pltpu.PrefetchScalarGridSpec(
        num_scalar_prefetch=0,
        grid=grid,
        in_specs=[
            pl.BlockSpec((Bt, M), lambda g: (g, 0)),
            pl.BlockSpec((M, 1), const),
            pl.BlockSpec((1, 1), const),
            pl.BlockSpec((M, Co), const),
            pl.BlockSpec((1, Co), const),
            pl.BlockSpec((L, K * Co), const),
            pl.BlockSpec((L, K * Co), const),
            pl.BlockSpec((K * Co, Emb), const),
            pl.BlockSpec((1, Emb), const),
            pl.BlockSpec((Emb, Siz), const),
            pl.BlockSpec((1, Siz), const),
        ],
        out_specs=(
            pl.BlockSpec((Bt * L, Siz), lambda g: (g, 0)),
            pl.BlockSpec((Bt, 1), lambda g: (g, 0)),
        ),
    )

    note, tempo = pl.pallas_call(
        _music_decoder_kernel,
        out_shape=(jax.ShapeDtypeStruct((B * L, Siz), f32),
                   jax.ShapeDtypeStruct((B, 1), f32)),
        grid_spec=grid_spec,
        compiler_params=pltpu.CompilerParams(
            dimension_semantics=("parallel",)),
    )(x, wt, bt, wh, bh, w2, b2, cw, cb, uw, ub)
    return note, tempo[:, 0]


def _reference(inp, lin_w, lin_b, unpool_w, unpool_b,
               conv_w, conv_b, unemb_w, unemb_b, L, K):
    """Pure-JAX f32 reference mirroring the PyTorch forward (inference)."""
    B, M = inp.shape
    Co = lin_w.shape[0] - 1
    Emb = conv_w.shape[0]
    T = L + K - 1
    hid_full = inp @ lin_w.T + lin_b                    # (B, 1+Co)
    tempo = hid_full[:, 0]
    hid = hid_full[:, 1:]                               # (B, Co)
    up = hid.reshape(-1, 1) @ unpool_w.T + unpool_b     # (B*Co, T)
    up = jax.nn.relu(up.reshape(B, Co, T))
    conv = jnp.zeros((B, L, Emb), jnp.float32)
    for k in range(K):
        conv = conv + jnp.einsum('bcl,ec->ble', up[:, :, k:k + L], conv_w[:, :, k])
    conv = conv + conv_b[None, None, :]
    note = conv.reshape(B * L, Emb) @ unemb_w.T + unemb_b
    return note, tempo


if __name__ == "__main__":
    # Small deterministic config (config.music.* / config.note.*): L >= K.
    B, M, Co, L, K, Emb, Siz = 2, 8, 16, 8, 3, 32, 24
    T = L + K - 1

    key = jax.random.PRNGKey(0)
    ks = jax.random.split(key, 9)
    inp = jax.random.normal(ks[0], (B, M), dtype=jnp.float32)
    lin_w = jax.random.normal(ks[1], (1 + Co, M), dtype=jnp.float32) * 0.1
    lin_b = jax.random.normal(ks[2], (1 + Co,), dtype=jnp.float32) * 0.1
    unpool_w = jax.random.normal(ks[3], (T, 1), dtype=jnp.float32) * 0.1
    unpool_b = jax.random.normal(ks[4], (T,), dtype=jnp.float32) * 0.1
    conv_w = jax.random.normal(ks[5], (Emb, Co, K), dtype=jnp.float32) * 0.1
    conv_b = jax.random.normal(ks[6], (Emb,), dtype=jnp.float32) * 0.1
    unemb_w = jax.random.normal(ks[7], (Siz, Emb), dtype=jnp.float32) * 0.1
    unemb_b = jax.random.normal(ks[8], (Siz,), dtype=jnp.float32) * 0.1

    note, tempo = music_decoder_forward(
        inp, lin_w, lin_b, unpool_w, unpool_b, conv_w, conv_b,
        unemb_w, unemb_b, L=L, K=K)
    note = jax.block_until_ready(note)
    tempo = jax.block_until_ready(tempo)

    note_ref, tempo_ref = _reference(
        inp, lin_w, lin_b, unpool_w, unpool_b, conv_w, conv_b,
        unemb_w, unemb_b, L, K)

    assert note.shape == (B * L, Siz) and tempo.shape == (B,)
    # bf16 MXU operands with f32 accumulation -> modest tolerance vs f32 ref.
    assert jnp.allclose(note, note_ref, atol=2e-2, rtol=2e-2), "note mismatch"
    assert jnp.allclose(tempo, tempo_ref, atol=2e-2, rtol=2e-2), "tempo mismatch"

    print("KERNEL_OK")
</pallas_src>

<mosaic_0001>
module attributes {stable_mosaic.version = 11 : i64} {
  func.func @_music_decoder_kernel(%arg0: i32, %arg1: memref<2x8xbf16, #tpu.memory_space<vmem>>, %arg2: memref<8x1xbf16, #tpu.memory_space<vmem>>, %arg3: memref<1x1xf32, #tpu.memory_space<vmem>>, %arg4: memref<8x16xbf16, #tpu.memory_space<vmem>>, %arg5: memref<1x16xf32, #tpu.memory_space<vmem>>, %arg6: memref<8x48xf32, #tpu.memory_space<vmem>>, %arg7: memref<8x48xf32, #tpu.memory_space<vmem>>, %arg8: memref<48x32xbf16, #tpu.memory_space<vmem>>, %arg9: memref<1x32xf32, #tpu.memory_space<vmem>>, %arg10: memref<32x24xbf16, #tpu.memory_space<vmem>>, %arg11: memref<1x24xf32, #tpu.memory_space<vmem>>, %arg12: memref<16x24xf32, #tpu.memory_space<vmem>>, %arg13: memref<2x1xf32, #tpu.memory_space<vmem>>) attributes {dimension_semantics = [#tpu.dimension_semantics<parallel>], iteration_bounds = array<i64: 1>, scalar_prefetch = 0 : i64, scratch_operands = 0 : i64, tpu.core_type = #tpu.core_type<tc>, window_params = [{transform_indices = @transform_0, window_bounds = array<i64: 2, 8>}, {pipeline_mode = #tpu.pipeline_mode<synchronous>, transform_indices = @transform_1, window_bounds = array<i64: 8, 1>}, {pipeline_mode = #tpu.pipeline_mode<synchronous>, transform_indices = @transform_2, window_bounds = array<i64: 1, 1>}, {pipeline_mode = #tpu.pipeline_mode<synchronous>, transform_indices = @transform_3, window_bounds = array<i64: 8, 16>}, {pipeline_mode = #tpu.pipeline_mode<synchronous>, transform_indices = @transform_4, window_bounds = array<i64: 1, 16>}, {pipeline_mode = #tpu.pipeline_mode<synchronous>, transform_indices = @transform_5, window_bounds = array<i64: 8, 48>}, {pipeline_mode = #tpu.pipeline_mode<synchronous>, transform_indices = @transform_6, window_bounds = array<i64: 8, 48>}, {pipeline_mode = #tpu.pipeline_mode<synchronous>, transform_indices = @transform_7, window_bounds = array<i64: 48, 32>}, {pipeline_mode = #tpu.pipeline_mode<synchronous>, transform_indices = @transform_8, window_bounds = array<i64: 1, 32>}, {pipeline_mode = #tpu.pipeline_mode<synchronous>, transform_indices = @transform_9, window_bounds = array<i64: 32, 24>}, {pipeline_mode = #tpu.pipeline_mode<synchronous>, transform_indices = @transform_10, window_bounds = array<i64: 1, 24>}, {transform_indices = @transform_11, window_bounds = array<i64: 16, 24>}, {transform_indices = @transform_12, window_bounds = array<i64: 2, 1>}]} {
    %c0 = arith.constant 0 : index
    %c0_0 = arith.constant 0 : index
    %0 = vector.load %arg1[%c0, %c0_0] : memref<2x8xbf16, #tpu.memory_space<vmem>>, vector<2x8xbf16>
    %c0_1 = arith.constant 0 : index
    %c0_2 = arith.constant 0 : index
    %1 = vector.load %arg2[%c0_1, %c0_2] : memref<8x1xbf16, #tpu.memory_space<vmem>>, vector<8x1xbf16>
    %cst = arith.constant dense<0.000000e+00> : vector<2x1xf32>
    %2 = tpu.matmul %0, %1, %cst {dimension_numbers = #tpu.dot_dimension_numbers<[1], [0], [0], [1], [0, 0, 1, 1], [], []>} : vector<2x8xbf16>, vector<8x1xbf16>, vector<2x1xf32> -> vector<2x1xf32>
    %c0_3 = arith.constant 0 : index
    %c0_4 = arith.constant 0 : index
    %3 = vector.load %arg3[%c0_3, %c0_4] : memref<1x1xf32, #tpu.memory_space<vmem>>, vector<1x1xf32>
    %4 = vector.broadcast %3 : vector<1x1xf32> to vector<2x1xf32>
    %5 = arith.addf %2, %4 : vector<2x1xf32>
    %c0_5 = arith.constant 0 : index
    %c0_6 = arith.constant 0 : index
    %6 = vector.load %arg13[%c0_5, %c0_6] : memref<2x1xf32, #tpu.memory_space<vmem>>, vector<2x1xf32>
    tpu.vector_store %arg13[%c0_5, %c0_6], %5 {strides = array<i32>} : memref<2x1xf32, #tpu.memory_space<vmem>>, vector<2x1xf32>,
    %c0_7 = arith.constant 0 : index
    %c0_8 = arith.constant 0 : index
    %7 = vector.load %arg4[%c0_7, %c0_8] : memref<8x16xbf16, #tpu.memory_space<vmem>>, vector<8x16xbf16>
    %cst_9 = arith.constant dense<0.000000e+00> : vector<2x16xf32>
    %8 = tpu.matmul %0, %7, %cst_9 {dimension_numbers = #tpu.dot_dimension_numbers<[1], [0], [0], [1], [0, 0, 1, 1], [], []>} : vector<2x8xbf16>, vector<8x16xbf16>, vector<2x16xf32> -> vector<2x16xf32>
    %c0_10 = arith.constant 0 : index
    %c0_11 = arith.constant 0 : index
    %9 = vector.load %arg5[%c0_10, %c0_11] : memref<1x16xf32, #tpu.memory_space<vmem>>, vector<1x16xf32>
    %10 = vector.broadcast %9 : vector<1x16xf32> to vector<2x16xf32>
    %11 = arith.addf %8, %10 : vector<2x16xf32>
    %12 = tpu.concatenate %11, %11, %11 in 1 : vector<2x16xf32>, vector<2x16xf32>, vector<2x16xf32> -> vector<2x48xf32>
    %13 = vector.shape_cast %12 : vector<2x48xf32> to vector<2x1x48xf32>
    %c0_12 = arith.constant 0 : index
    %c0_13 = arith.constant 0 : index
    %14 = vector.load %arg6[%c0_12, %c0_13] : memref<8x48xf32, #tpu.memory_space<vmem>>, vector<8x48xf32>
    %15 = vector.shape_cast %14 : vector<8x48xf32> to vector<1x8x48xf32>
    %16 = vector.broadcast %13 : vector<2x1x48xf32> to vector<2x8x48xf32>
    %17 = vector.broadcast %15 : vector<1x8x48xf32> to vector<2x8x48xf32>
    %18 = arith.mulf %16, %17 : vector<2x8x48xf32>
    %c0_14 = arith.constant 0 : index
    %c0_15 = arith.constant 0 : index
    %19 = vector.load %arg7[%c0_14, %c0_15] : memref<8x48xf32, #tpu.memory_space<vmem>>, vector<8x48xf32>
    %20 = vector.shape_cast %19 : vector<8x48xf32> to vector<1x8x48xf32>
    %21 = vector.broadcast %20 : vector<1x8x48xf32> to vector<2x8x48xf32>
    %22 = arith.addf %18, %21 : vector<2x8x48xf32>
    %cst_16 = arith.constant 0.000000e+00 : f32
    %23 = vector.broadcast %cst_16 : f32 to vector<2x8x48xf32>
    %24 = arith.maximumf %22, %23 : vector<2x8x48xf32>
    %25 = vector.shape_cast %24 : vector<2x8x48xf32> to vector<16x48xf32>
    %26 = arith.truncf %25 : vector<16x48xf32> to vector<16x48xbf16>
    %c0_17 = arith.constant 0 : index
    %c0_18 = arith.constant 0 : index
    %27 = vector.load %arg8[%c0_17, %c0_18] : memref<48x32xbf16, #tpu.memory_space<vmem>>, vector<48x32xbf16>
    %cst_19 = arith.constant dense<0.000000e+00> : vector<16x32xf32>
    %28 = tpu.matmul %26, %27, %cst_19 {dimension_numbers = #tpu.dot_dimension_numbers<[1], [0], [0], [1], [0, 0, 1, 1], [], []>} : vector<16x48xbf16>, vector<48x32xbf16>, vector<16x32xf32> -> vector<16x32xf32>
    %c0_20 = arith.constant 0 : index
    %c0_21 = arith.constant 0 : index
    %29 = vector.load %arg9[%c0_20, %c0_21] : memref<1x32xf32, #tpu.memory_space<vmem>>, vector<1x32xf32>
    %30 = vector.broadcast %29 : vector<1x32xf32> to vector<16x32xf32>
    %31 = arith.addf %28, %30 : vector<16x32xf32>
    %32 = arith.truncf %31 : vector<16x32xf32> to vector<16x32xbf16>
    %c0_22 = arith.constant 0 : index
    %c0_23 = arith.constant 0 : index
    %33 = vector.load %arg10[%c0_22, %c0_23] : memref<32x24xbf16, #tpu.memory_space<vmem>>, vector<32x24xbf16>
    %cst_24 = arith.constant dense<0.000000e+00> : vector<16x24xf32>
    %34 = tpu.matmul %32, %33, %cst_24 {dimension_numbers = #tpu.dot_dimension_numbers<[1], [0], [0], [1], [0, 0, 1, 1], [], []>} : vector<16x32xbf16>, vector<32x24xbf16>, vector<16x24xf32> -> vector<16x24xf32>
    %c0_25 = arith.constant 0 : index
    %c0_26 = arith.constant 0 : index
    %35 = vector.load %arg11[%c0_25, %c0_26] : memref<1x24xf32, #tpu.memory_space<vmem>>, vector<1x24xf32>
    %36 = vector.broadcast %35 : vector<1x24xf32> to vector<16x24xf32>
    %37 = arith.addf %34, %36 : vector<16x24xf32>
    %c0_27 = arith.constant 0 : index
    %c0_28 = arith.constant 0 : index
    %38 = vector.load %arg12[%c0_27, %c0_28] : memref<16x24xf32, #tpu.memory_space<vmem>>, vector<16x24xf32>
    tpu.vector_store %arg12[%c0_27, %c0_28], %37 {strides = array<i32>} : memref<16x24xf32, #tpu.memory_space<vmem>>, vector<16x24xf32>,
    return
  }
  func.func @transform_0(%arg0: i32) -> (i32, i32) {
    %c0_i32 = arith.constant 0 : i32
    %c0_i32_0 = arith.constant 0 : i32
    return %arg0, %c0_i32 : i32, i32
  }
  func.func @transform_1(%arg0: i32) -> (i32, i32) {
    %c0_i32 = arith.constant 0 : i32
    %c0_i32_0 = arith.constant 0 : i32
    %c0_i32_1 = arith.constant 0 : i32
    return %c0_i32, %c0_i32_0 : i32, i32
  }
  func.func @transform_2(%arg0: i32) -> (i32, i32) {
    %c0_i32 = arith.constant 0 : i32
    %c0_i32_0 = arith.constant 0 : i32
    %c0_i32_1 = arith.constant 0 : i32
    return %c0_i32, %c0_i32_0 : i32, i32
  }
  func.func @transform_3(%arg0: i32) -> (i32, i32) {
    %c0_i32 = arith.constant 0 : i32
    %c0_i32_0 = arith.constant 0 : i32
    %c0_i32_1 = arith.constant 0 : i32
    return %c0_i32, %c0_i32_0 : i32, i32
  }
  func.func @transform_4(%arg0: i32) -> (i32, i32) {
    %c0_i32 = arith.constant 0 : i32
    %c0_i32_0 = arith.constant 0 : i32
    %c0_i32_1 = arith.constant 0 : i32
    return %c0_i32, %c0_i32_0 : i32, i32
  }
  func.func @transform_5(%arg0: i32) -> (i32, i32) {
    %c0_i32 = arith.constant 0 : i32
    %c0_i32_0 = arith.constant 0 : i32
    %c0_i32_1 = arith.constant 0 : i32
    return %c0_i32, %c0_i32_0 : i32, i32
  }
  func.func @transform_6(%arg0: i32) -> (i32, i32) {
    %c0_i32 = arith.constant 0 : i32
    %c0_i32_0 = arith.constant 0 : i32
    %c0_i32_1 = arith.constant 0 : i32
    return %c0_i32, %c0_i32_0 : i32, i32
  }
  func.func @transform_7(%arg0: i32) -> (i32, i32) {
    %c0_i32 = arith.constant 0 : i32
    %c0_i32_0 = arith.constant 0 : i32
    %c0_i32_1 = arith.constant 0 : i32
    return %c0_i32, %c0_i32_0 : i32, i32
  }
  func.func @transform_8(%arg0: i32) -> (i32, i32) {
    %c0_i32 = arith.constant 0 : i32
    %c0_i32_0 = arith.constant 0 : i32
    %c0_i32_1 = arith.constant 0 : i32
    return %c0_i32, %c0_i32_0 : i32, i32
  }
  func.func @transform_9(%arg0: i32) -> (i32, i32) {
    %c0_i32 = arith.constant 0 : i32
    %c0_i32_0 = arith.constant 0 : i32
    %c0_i32_1 = arith.constant 0 : i32
    return %c0_i32, %c0_i32_0 : i32, i32
  }
  func.func @transform_10(%arg0: i32) -> (i32, i32) {
    %c0_i32 = arith.constant 0 : i32
    %c0_i32_0 = arith.constant 0 : i32
    %c0_i32_1 = arith.constant 0 : i32
    return %c0_i32, %c0_i32_0 : i32, i32
  }
  func.func @transform_11(%arg0: i32) -> (i32, i32) {
    %c0_i32 = arith.constant 0 : i32
    %c0_i32_0 = arith.constant 0 : i32
    return %arg0, %c0_i32 : i32, i32
  }
  func.func @transform_12(%arg0: i32) -> (i32, i32) {
    %c0_i32 = arith.constant 0 : i32
    %c0_i32_0 = arith.constant 0 : i32
    return %arg0, %c0_i32 : i32, i32
  }
}

</mosaic_0001>

<bundles_post_ra>
// kernel: tpu_custom_call.1
= control target key start
LH: loop header
LB: loop body
LE: loop exit
PB: predicated region body
PF: predicated region fallthrough
CT: control target
= control target key end

     0   :  { %s603_s0 = inlined_call_operand.vmem [shape: bf16[2,8], index: 0, kind: input, shape index: {}]   ;;  %s604_s1 = inlined_call_operand.vmem [shape: bf16[8,1], index: 1, kind: input, shape index: {}]   ;;  %s605_s2 = inlined_call_operand.<no memory space> [shape: f32[1,1], index: 2, kind: input, shape index: {}]   ;;  %s606_s3 = inlined_call_operand.vmem [shape: bf16[8,16], index: 3, kind: input, shape index: {}]   ;;  %s607_s4 = inlined_call_operand.vmem [shape: f32[1,16], index: 4, kind: input, shape index: {}]   ;;  %s608_s5 = inlined_call_operand.vmem [shape: f32[8,48], index: 5, kind: input, shape index: {}]   ;;  %s609_s6 = inlined_call_operand.vmem [shape: f32[8,48], index: 6, kind: input, shape index: {}]   ;;  %s610_s7 = inlined_call_operand.vmem [shape: bf16[48,32], index: 7, kind: input, shape index: {}]   ;;  %s611_s8 = inlined_call_operand.vmem [shape: f32[1,32], index: 8, kind: input, shape index: {}]   ;;  %s612_s9 = inlined_call_operand.vmem [shape: bf16[32,24], index: 9, kind: input, shape index: {}]   ;;  %s613_s10 = inlined_call_operand.vmem [shape: f32[1,24], index: 10, kind: input, shape index: {}]   ;;  %s614_s11 = inlined_call_operand.hbm [shape: f32[16,24], index: 11, kind: output, shape index: {0}]   ;;  %s615_s12 = inlined_call_operand.vmem [shape: f32[2,1], index: 12, kind: output, shape index: {1}]  }
   0x1   :  { %v18_v0 = vstv %s605_s2 }
   0x2   :  { %19 = vst [vmem:[#allocation2] sm:$0x1] %v18_v0 }
   0x3   :  { %vm57_vm0 = vcmask 1043456   ;;  %v103_v1 = vld [vmem:[%s606_s3] sm:$0xf]  ;;  %v465_v2 = vmov 0.0   ;;  %vm466_vm1 = vmmov 0   ;;  %vm53_vm2 = vcmask 64512  }
   0x4   :  { %404 = vmatprep.subr.bf16.mxu1 %v465_v2  ;;  %v112_v3 = vsel %vm57_vm0, %v103_v1, 0  ;;  %406 = vmatprep.mubr.msk.bf16.mxu1 %vm466_vm1, %v465_v2  ;;  %v44_v4 = vld [vmem:[%s603_s0] sm:$0x1] }
   0x5   :  { %405 = vmatpush3.bf16.msra.mxu1 %v112_v3  ;;  %398 = vmatprep.subr.bf16.mxu0 %v465_v2 }
   0x6   :  { %400 = vmatprep.mubr.msk.bf16.mxu0 %vm466_vm1, %v465_v2  ;;  %420 = vmatprep.subr.bf16.mxu1 %v465_v2 }
   0x8   :  { %407 = vmatmul.mubr.msk.bf16.vlgmr.msra.gmra.mrb[0].mxu1 %vm53_vm2, %v44_v4 }
   0x9   :  { %20 = vsyncpa [#allocation4], 0  ;;  %424 = vmatprep.mubr.msk.bf16.mxu1 %vm466_vm1, %v465_v2  ;;  %v45_v5 = vld [vmem:[%s604_s1] sm:$0xf]  ;;  %v437_v13 = vld [vmem:[%s610_s7 + $0x8] sm:$0xff]   ;;  %s467_s13 = smov 16   ;;  %v169_v19 = vlaneseq }
   0xa   :  { %v59_v6 = vsel %vm57_vm0, %v45_v5, 0  ;;  %v376_v7 = vld [vmem:[%s607_s4] ss:$0 sm:$0xff]  ;;  %v438_v15 = vld [vmem:[%s610_s7 + $0x10] sm:$0xff]   ;;  %s468_s15 = smov 32   ;;  %vm161_vm3 = vcmask 130048  }
   0xb   :  { %399 = vmatpush3.bf16.msra.mxu0 %v59_v6  ;;  %v436_v8 = vld [vmem:[%s610_s7] sm:$0xff]   ;;  %v469_v17 = vmov 1966171168   ;;  %v170_v21 = vshrl.u32 %v169_v19, 7  ;;  %vm163_vm4 = vcmask 261120   ;;  %vm238_vm5 = vcmask 392192  }
   0xc   :  { %410 = vmatprep.subr.bf16.mxu0 %v465_v2  ;;  %v439_v16 = vld [vmem:[%s612_s9] sm:$0xff]   ;;  %v167_v18 = vunpack.c.l.s4 %v469_v17  ;;  %vm101_vm6 = vcmask 1024   ;;  %v440_v49 = vld [vmem:[%s612_s9 + $0x8] sm:$0xff]   ;;  %s470_s26 = smov [#allocation3]   ;;  %vm351_vm7 = vcmask 195584  }
   0xd   :  { %421 = vmatpush3.bf16.msra.mxu1 %v439_v16  ;;  %v191_v27 = vsub.s32 0, %v170_v21  ;;  %v188_v31 = vld [vmem:[%s608_s5] sm:$0xff]  ;;  %s359_s9 = sshll.u32 %s470_s26, 4  ;;  %s360_s9 = int_to_ptr.vmem [resolvable:$true] %s359_s9 }
   0xe   :  { %401 = vmatmul.mubr.msk.bf16.vlgmr.msra.gmra.mrb[0].mxu0 %vm53_vm2, %v44_v4  ;;  %422 = vmatprep.subr.bf16.mxu1 %v465_v2  ;;  %v168_v20 = vunpack.c.0.s8 %v167_v18  ;;  %v201_v34 = vld [vmem:[%s609_s6] sm:$0xff]  ;;  %p446_p1 = scmp.lt.s32.totalorder %s360_s9, %s360_s9 }
   0xf   :  { %416 = vmatprep.mubr.msk.bf16.mxu0 %vm466_vm1, %v465_v2  ;;  %411 = vmatpush3.bf16.msra.mxu0 %v436_v8  ;;  %v374_v43 = vld [vmem:[#allocation2] ss:$0 sm:$0xff] }
  0x10   :  { %412 = vmatprep.subr.bf16.mxu0 %v465_v2  ;;  %v171_v23 = vsub.s32 %v168_v20, %v170_v21  ;;  %v378_v50 = vld [vmem:[%s611_s8] ss:$0 sm:$0xff]  ;;  %s441_s8 = scalar_lea.vmem %s360_s9, 256 }
  0x11   :  { %423 = vmatpush3.bf16.msra.mxu1 %v440_v49  ;;  %v383_v58 = vld [vmem:[%s613_s10] ss:$0 sm:$0xff]  ;;  %p442_p0 = scmp.ne.s32.totalorder %s360_s9, %s441_s8  ;;  %p447_p2 = scmp.lt.s32.totalorder %s441_s8, %s441_s8 }
  0x13   :  { %413 = vmatpush3.bf16.msra.mxu0 %v437_v13  ;;  %p448_p3 = por %p447_p2, %p446_p1 }
  0x14   :  { %414 = vmatprep.subr.bf16.mxu0 %v465_v2 }
  0x15   :  { %p449_p4 = pnand %p448_p3, %p442_p0 }
  0x17   :  { %415 = vmatpush3.bf16.msra.mxu0 %v438_v15 }
  0xdb   :  { %v148_v9 = vpop.f32.mrb[0].mxu1 }
  0xdc   :  { %v149_v10 = vadd.f32 %v376_v7, %v148_v9  ;;  %v408_v11 = vpop.f32.mrb[1].mxu1 }
  0xdd   :  { %v151_v12 = vpop.f32.mrb[2].mxu1 }
  0xde   :  { %155 = vrot.lane.b32.xlu0 %v149_v10, %s467_s13  ;;  %v409_v14 = vpop.f32.mrb[3].mxu1 }
  0xe1   :  { %v95_v44 = vpop.f32.mrb[0].mxu0 }
  0xe2   :  { %158 = vrot.lane.b32.xlu0 %v149_v10, %s468_s15  ;;  %v96_v45 = vadd.f32 %v374_v43, %v95_v44  ;;  %v402_v46 = vpop.f32.mrb[1].mxu0 }
  0xe3   :  { %v98_v47 = vpop.f32.mrb[2].mxu0 }
  0xe4   :  { %102 = vst.msk [vmem:[%s615_s12] sm:$0x3] %vm101_vm6, %v96_v45  ;;  %v403_v48 = vpop.f32.mrb[3].mxu0 }
 0x150   :  { %v156_v22 = vpop.permute.xlu0 %155 }
 0x151   :  { %v162_v24 = vsel %vm161_vm3, %v149_v10, %v156_v22 }
 0x154   :  { %v159_v25 = vpop.permute.xlu0 %158 }
 0x155   :  { %v164_v26 = vsel %vm163_vm4, %v162_v24, %v159_v25 }
 0x156   :  { %v172_v28 = vrot.slane %v164_v26, %v171_v23 }
 0x158   :  { %v173_v29 = vcombine.high %v172_v28, %v172_v28  ;;  %v180_v30 = vrot.slane %v172_v28, %v171_v23 }
 0x15a   :  { %v187_v32 = vrot.slane %v173_v29, %v171_v23  ;;  %v192_v33 = vrot.slane %v180_v30, %v191_v27 }
 0x15c   :  { %v196_v35 = vrot.slane %v187_v32, %v191_v27  ;;  %v199_v36 = vmul.f32 %v192_v33, %v188_v31 }
 0x15e   :  { %v200_v37 = vmul.f32 %v196_v35, %v188_v31  ;;  %v202_v38 = vadd.f32 %v201_v34, %v199_v36 }
 0x160   :  { %v203_v39 = vadd.f32 %v201_v34, %v200_v37  ;;  %v204_v40 = vmax.f32 %v202_v38, 0.0 }
 0x162   :  { %v205_v41 = vmax.f32 %v203_v39, 0.0 }
 0x164   :  { %v206_v42 = vpack.c.bf16 %v205_v41, %v204_v40 }
 0x166   :  { %417 = vmatmul.mubr.msk.bf16.vlgmr.msra.gmra.mrb[4].mxu0 %vm238_vm5, %v206_v42 }
 0x239   :  { %v276_v51 = vpop.f32.mrb[4].mxu0 }
 0x23a   :  { %v418_v52 = vpop.f32.mrb[5].mxu0  ;;  %v277_v54 = vadd.f32 %v378_v50, %v276_v51 }
 0x23b   :  { %v279_v53 = vpop.f32.mrb[6].mxu0 }
 0x23c   :  { %v280_v55 = vadd.f32 %v378_v50, %v279_v53  ;;  %v419_v56 = vpop.f32.mrb[7].mxu0 }
 0x23e   :  { %v283_v57 = vpack.c.bf16 %v280_v55, %v277_v54 }
 0x240   :  { %425 = vmatmul.mubr.msk.bf16.vlgmr.msra.gmra.mrb[4].mxu1 %vm163_vm4, %v283_v57 }
 0x313   :  { %v344_v59 = vpop.f32.mrb[4].mxu1 }
 0x314   :  { %v345_v60 = vadd.f32 %v383_v58, %v344_v59  ;;  %v426_v61 = vpop.f32.mrb[5].mxu1 }
 0x315   :  { %v347_v62 = vpop.f32.mrb[6].mxu1 }
 0x316   :  { %352 = vst.msk [vmem:[#allocation3] sm:$0xff] %vm351_vm7, %v345_v60  ;;  %v348_v63 = vadd.f32 %v383_v58, %v347_v62  ;;  %v427_v0 = vpop.f32.mrb[7].mxu1 }
 0x318   :  { %353 = vst.msk [vmem:[#allocation3 + $0x8] sm:$0xff] %vm351_vm7, %v348_v63 }
 0x319   :  { %452 = shalt.err (!%p449_p4)
}
 0x31a   :  { %s453_s3 = scalar_lea.hbm %s614_s11, 256 }
 0x31b   :  { %p454_p5 = scmp.ne.s32.totalorder %s614_s11, %s453_s3  ;;  %p457_p6 = scmp.lt.u32.totalorder %s453_s3, %s614_s11 }
 0x31d   :  { %p459_p7 = pnand %p457_p6, %p454_p5 }
 0x31f   :  { %462 = shalt.err (!%p459_p7)
}
 0x320   :  { %s471_s1 = smov 128   ;;  %s472_s30 = smov 8  }
 0x321   :  { %365 = dma.vmem_to_hbm [thread:$0]  %s360_s9, 256, %s614_s11, [#allocation4], %s471_s1, %s471_s1, %s472_s30  }
 0x322   :  { %463 = dma.done.wait [#allocation4], 256  }
 0x323   :  { %464 = vsyncadd [#allocation4], 4294967040 }
 0x324   :  { %373 = vsyncpa [#allocation4], 1 }

</bundles_post_ra>
